<compile_context>
chip_gen: v6e
topology: v6e:2x2x1
jax: 0.10.0
libtpu: 0.0.40
codegen_flags: <defaults>
</compile_context>

<pallas_src>
import functools

import jax
import jax.numpy as jnp
import numpy as np
from jax.experimental import pallas as pl
from jax.experimental.pallas import tpu as pltpu


def _round_up(x, m):
    return (x + m - 1) // m * m


def _padded_vmem_bytes(shape, itemsize):
    """Conservative VMEM footprint of a block: last dim -> 128 lanes,
    second-to-last -> 16 sublanes (covers bf16 packing too)."""
    s = list(shape)
    s[-1] = _round_up(int(s[-1]), 128)
    if len(s) >= 2:
        s[-2] = _round_up(int(s[-2]), 16)
    n = 1
    for d in s:
        n *= int(d)
    return n * itemsize


def _fused_gru_kernel(x_ref, h0_ref, w_in_ref, w_hh_ref, b_ref, hn_ref,
                      carry_ref, *, H, Lblk, unroll):
    """One grid step == one block of `Lblk` consecutive GRU layers.

    x_ref:     (Bp, Mw)        f32  padded external input (consumed at layer 0)
    h0_ref:    (Lblk, Bp, H)   f32  initial hidden states of this layer block
    w_in_ref:  (Lblk, Mw, Gp)  bf16 input projection, gate cols [r|z|n_i| 0 ]
    w_hh_ref:  (Lblk, H,  Gp)  bf16 hidden projection, gate cols [r|z| 0 |n_h]
    b_ref:     (L,    1,  Gp)  f32  resident fused bias (r/z = b_ih + b_hh)
    hn_ref:    (Lblk, Bp, H)   f32  new hidden states (output)
    carry_ref: (Bp, Mw)        f32  running activation, persists across steps
    """
    step = pl.program_id(0)

    @pl.when(step == 0)
    def _():
        carry_ref[...] = x_ref[...]

    def layer_body(l, carry):
        layer = step * Lblk + l
        h0 = h0_ref[l]                                  # (Bp, H) f32
        wi = w_in_ref[l]                                # (Mw, Gp) bf16
        wh = w_hh_ref[l]                                # (H,  Gp) bf16

        x_in = carry_ref[...]                           # (Bp, Mw) f32
        gi = jnp.dot(x_in.astype(wi.dtype), wi,
                     preferred_element_type=jnp.float32)
        gh = jnp.dot(h0.astype(wh.dtype), wh,
                     preferred_element_type=jnp.float32)
        g = gi + gh + b_ref[layer]                      # (Bp, Gp) f32

        # Gate math on VPU/EUP; contiguous gate slices of width H.
        r = jax.nn.sigmoid(g[:, 0:H])
        z = jax.nn.sigmoid(g[:, H:2 * H])
        n = jnp.tanh(g[:, 2 * H:3 * H] + r * g[:, 3 * H:4 * H])
        h_new = n + z * (h0 - n)                        # == (1-z)*n + z*h0

        hn_ref[l] = h_new.astype(hn_ref.dtype)
        # Next layer's input.  Stale columns [H:Mw] need no clearing: the
        # corresponding w_in rows of every later layer are zero.
        carry_ref[:, 0:H] = h_new
        # TODO(synk): training-mode dropout between layers (pltpu.prng_*) is
        # not implemented; eval-mode nn.Dropout is the identity.
        return carry

    jax.lax.fori_loop(0, Lblk, layer_body, 0, unroll=unroll)


def init_stacking_gru_params(key, input_size, hidden_size, num_layers,
                             dtype=jnp.float32):
    """Deterministic init; same shapes/uniform range as torch.nn.GRUCell."""
    params = []
    bound = 1.0 / float(hidden_size) ** 0.5
    in_sizes = [input_size] + [hidden_size] * (num_layers - 1)
    for i, in_sz in enumerate(in_sizes):
        k = jax.random.fold_in(key, i)
        k1, k2, k3, k4 = jax.random.split(k, 4)
        params.append(dict(
            w_ih=jax.random.uniform(k1, (3 * hidden_size, in_sz), dtype, -bound, bound),
            w_hh=jax.random.uniform(k2, (3 * hidden_size, hidden_size), dtype, -bound, bound),
            b_ih=jax.random.uniform(k3, (3 * hidden_size,), dtype, -bound, bound),
            b_hh=jax.random.uniform(k4, (3 * hidden_size,), dtype, -bound, bound),
        ))
    return params


def pack_stacking_gru_params(params, input_size, hidden_size,
                             weight_dtype=jnp.bfloat16):
    """One-time packing: transpose, place the three gates of each projection
    in contiguous columns [r | z | n_i | n_h] (width H each, only the total
    rounded to 128 lanes), pre-add the r/z biases, quantize weights to bf16."""
    L = len(params)
    H = hidden_size
    Mw = max(input_size, H)            # carry width / input-projection rows
    Gp = _round_up(4 * H, 128)         # fused gate width (lane dim)

    w_in = np.zeros((L, Mw, Gp), np.float32)
    w_hh = np.zeros((L, H, Gp), np.float32)
    bias = np.zeros((L, 1, Gp), np.float32)
    in_sizes = [input_size] + [H] * (L - 1)
    for l, p in enumerate(params):
        K = in_sizes[l]
        wih_t = np.asarray(p["w_ih"], np.float32).T    # (K, 3H), gate order r,z,n
        whh_t = np.asarray(p["w_hh"], np.float32).T    # (H, 3H)
        b_ih = np.asarray(p["b_ih"], np.float32)
        b_hh = np.asarray(p["b_hh"], np.float32)

        w_in[l, :K, 0:H] = wih_t[:, 0:H]                    # r
        w_in[l, :K, H:2 * H] = wih_t[:, H:2 * H]            # z
        w_in[l, :K, 2 * H:3 * H] = wih_t[:, 2 * H:3 * H]    # n_i
        w_hh[l, :, 0:H] = whh_t[:, 0:H]                     # r
        w_hh[l, :, H:2 * H] = whh_t[:, H:2 * H]             # z
        w_hh[l, :, 3 * H:4 * H] = whh_t[:, 2 * H:3 * H]     # n_h

        bias[l, 0, 0:H] = b_ih[0:H] + b_hh[0:H]
        bias[l, 0, H:2 * H] = b_ih[H:2 * H] + b_hh[H:2 * H]
        bias[l, 0, 2 * H:3 * H] = b_ih[2 * H:3 * H]
        bias[l, 0, 3 * H:4 * H] = b_hh[2 * H:3 * H]

    return dict(
        w_in=jnp.asarray(w_in).astype(weight_dtype),
        w_hh=jnp.asarray(w_hh).astype(weight_dtype),
        b=jnp.asarray(bias),                 # bias kept f32 (tiny, resident)
        num_layers=L, hidden_size=H, input_size=input_size,
        Mw=Mw, Gp=Gp, weight_dtype=jnp.dtype(weight_dtype))


def stacking_gru_cell_forward(x, h0, packed):
    """Forward pass of StackingGRUCell (eval mode).

    x:  (batch, input_size)
    h0: (num_layers, batch, hidden_size)
    returns (output (batch, hidden), hn (num_layers, batch, hidden))
    """
    w_in, w_hh, bias = packed["w_in"], packed["w_hh"], packed["b"]
    L = packed["num_layers"]
    H = packed["hidden_size"]
    In = packed["input_size"]
    Mw, Gp = packed["Mw"], packed["Gp"]
    wbytes = packed["weight_dtype"].itemsize

    B = x.shape[0]
    Bp = _round_up(max(B, 8), 8)       # f32 activations -> 8-sublane alignment

    x_pad = jnp.zeros((Bp, Mw), jnp.float32).at[:B, :In].set(
        x.astype(jnp.float32))
    h0_pad = jnp.zeros((L, Bp, H), jnp.float32).at[:, :B, :].set(
        h0.astype(jnp.float32))

    # Whole weight stack resident (single grid step, fori_loop over layers)
    # when it fits a conservative VMEM budget; otherwise stream one layer
    # block per grid step (double-buffered by the Pallas pipeline).
    per_layer_w = (_padded_vmem_bytes((Mw, Gp), wbytes)
                   + _padded_vmem_bytes((H, Gp), wbytes))
    resident_bytes = L * (per_layer_w + 2 * _padded_vmem_bytes((Bp, H), 4))
    Lblk = L if resident_bytes <= 20 * 1024 * 1024 else 1
    grid = (L // Lblk,)
    unroll = Lblk <= 8
    # TODO(synk): for very large H (single-layer weight block > ~16 MiB, e.g.
    # on v7x's 64 MiB VMEM) add a gate/K reduction grid axis instead of Lblk=1.

    vmem_needed = (
        2 * _padded_vmem_bytes((Bp, Mw), 4)                 # x
        + 2 * _padded_vmem_bytes((Lblk, Bp, H), 4)          # h0 block
        + 2 * Lblk * per_layer_w                            # weight blocks
        + 2 * _padded_vmem_bytes((L, 1, Gp), 4)             # resident bias
        + 2 * _padded_vmem_bytes((Lblk, Bp, H), 4)          # hn block
        + _padded_vmem_bytes((Bp, Mw), 4)                   # carry scratch
    )
    vmem_limit = int(min(128 * 1024 * 1024,
                         max(16 * 1024 * 1024, 2 * vmem_needed + (4 << 20))))

    cost = pl.CostEstimate(
        flops=int(2 * L * Bp * (Mw + H) * Gp),
        transcendentals=int(3 * L * Bp * H),
        bytes_accessed=int(w_in.size * wbytes + w_hh.size * wbytes
                           + bias.size * 4 + x_pad.size * 4
                           + h0_pad.size * 4 + L * Bp * H * 4),
    )

    kernel = functools.partial(_fused_gru_kernel, H=H, Lblk=Lblk, unroll=unroll)

    hn_pad = pl.pallas_call(
        kernel,
        out_shape=jax.ShapeDtypeStruct((L, Bp, H), jnp.float32),
        grid_spec=pltpu.PrefetchScalarGridSpec(
            num_scalar_prefetch=0,
            grid=grid,
            in_specs=[
                pl.BlockSpec((Bp, Mw), lambda i: (0, 0)),            # x
                pl.BlockSpec((Lblk, Bp, H), lambda i: (i, 0, 0)),    # h0 block
                pl.BlockSpec((Lblk, Mw, Gp), lambda i: (i, 0, 0)),   # w_in block
                pl.BlockSpec((Lblk, H, Gp), lambda i: (i, 0, 0)),    # w_hh block
                pl.BlockSpec((L, 1, Gp), lambda i: (0, 0, 0)),       # bias resident
            ],
            out_specs=pl.BlockSpec((Lblk, Bp, H), lambda i: (i, 0, 0)),
            scratch_shapes=[pltpu.VMEM((Bp, Mw), jnp.float32)],
        ),
        compiler_params=pltpu.CompilerParams(
            dimension_semantics=("arbitrary",),        # serial layer chain
            vmem_limit_bytes=vmem_limit),
        cost_estimate=cost,
    )(x_pad, h0_pad, w_in, w_hh, bias)

    hn = hn_pad[:, :B, :].astype(x.dtype)
    return hn[-1], hn


if __name__ == "__main__":
    batch = 8
    input_size = 32
    hidden_size = 32
    num_layers = 2

    key = jax.random.PRNGKey(0)
    kx, kh, kp = jax.random.split(key, 3)

    x = jax.random.normal(kx, (batch, input_size), jnp.float32)
    h0 = jax.random.normal(kh, (num_layers, batch, hidden_size), jnp.float32)
    raw_params = init_stacking_gru_params(kp, input_size, hidden_size, num_layers)
    packed = pack_stacking_gru_params(raw_params, input_size, hidden_size,
                                      weight_dtype=jnp.bfloat16)

    output, hn = stacking_gru_cell_forward(x, h0, packed)
    jax.block_until_ready((output, hn))

    # Matched-precision pure-JAX reference (torch.nn.GRUCell semantics, gate
    # order r,z,n): weights and matmul inputs quantized to bf16 exactly like
    # the kernel, accumulation and gate math in f32.
    def ref_gru(xi, hi, p):
        H = hidden_size
        wih = p["w_ih"].astype(jnp.bfloat16)
        whh = p["w_hh"].astype(jnp.bfloat16)
        gi = jnp.dot(xi.astype(jnp.bfloat16), wih.T,
                     preferred_element_type=jnp.float32) + p["b_ih"]
        gh = jnp.dot(hi.astype(jnp.bfloat16), whh.T,
                     preferred_element_type=jnp.float32) + p["b_hh"]
        r = jax.nn.sigmoid(gi[:, :H] + gh[:, :H])
        z = jax.nn.sigmoid(gi[:, H:2 * H] + gh[:, H:2 * H])
        n = jnp.tanh(gi[:, 2 * H:] + r * gh[:, 2 * H:])
        return (1.0 - z) * n + z * hi

    out_ref = x
    hn_ref = []
    for i, p in enumerate(raw_params):
        h_i = ref_gru(out_ref, h0[i], p)
        hn_ref.append(h_i)
        out_ref = h_i
    hn_ref = jnp.stack(hn_ref)

    assert jnp.allclose(output, out_ref, atol=2e-3, rtol=2e-3), float(
        jnp.max(jnp.abs(output - out_ref)))
    assert jnp.allclose(hn, hn_ref, atol=2e-3, rtol=2e-3), float(
        jnp.max(jnp.abs(hn - hn_ref)))

    print("KERNEL_OK")
</pallas_src>

<mosaic_0001>
module attributes {stable_mosaic.version = 11 : i64} {
  func.func @_fused_gru_kernel(%arg0: i32, %arg1: memref<8x32xf32, #tpu.memory_space<vmem>>, %arg2: memref<2x8x32xf32, #tpu.memory_space<vmem>>, %arg3: memref<2x32x128xbf16, #tpu.memory_space<vmem>>, %arg4: memref<2x32x128xbf16, #tpu.memory_space<vmem>>, %arg5: memref<2x1x128xf32, #tpu.memory_space<vmem>>, %arg6: memref<2x8x32xf32, #tpu.memory_space<vmem>>, %arg7: memref<8x32xf32, #tpu.memory_space<vmem>>) attributes {dimension_semantics = [#tpu.dimension_semantics<arbitrary>], iteration_bounds = array<i64: 1>, scalar_prefetch = 0 : i64, scratch_operands = 1 : i64, tpu.core_type = #tpu.core_type<tc>, window_params = [{pipeline_mode = #tpu.pipeline_mode<synchronous>, transform_indices = @transform_0, window_bounds = array<i64: 8, 32>}, {transform_indices = @transform_1, window_bounds = array<i64: 2, 8, 32>}, {transform_indices = @transform_2, window_bounds = array<i64: 2, 32, 128>}, {transform_indices = @transform_3, window_bounds = array<i64: 2, 32, 128>}, {pipeline_mode = #tpu.pipeline_mode<synchronous>, transform_indices = @transform_4, window_bounds = array<i64: 2, 1, 128>}, {transform_indices = @transform_5, window_bounds = array<i64: 2, 8, 32>}]} {
    %c0_i32 = arith.constant 0 : i32
    %0 = arith.cmpi eq, %arg0, %c0_i32 : i32
    %1 = arith.extui %0 : i1 to i32
    %c0_i32_0 = arith.constant 0 : i32
    %2 = arith.cmpi ne, %1, %c0_i32_0 : i32
    scf.if %2 {
      %c0_38 = arith.constant 0 : index
      %c0_39 = arith.constant 0 : index
      %97 = vector.load %arg1[%c0_38, %c0_39] : memref<8x32xf32, #tpu.memory_space<vmem>>, vector<8x32xf32>
      %c0_40 = arith.constant 0 : index
      %c0_41 = arith.constant 0 : index
      %98 = vector.load %arg7[%c0_40, %c0_41] : memref<8x32xf32, #tpu.memory_space<vmem>>, vector<8x32xf32>
      tpu.vector_store %arg7[%c0_40, %c0_41], %97 {strides = array<i32>} : memref<8x32xf32, #tpu.memory_space<vmem>>, vector<8x32xf32>,
    } else {
    }
    %c0_i32_1 = arith.constant 0 : i32
    %c2_i32 = arith.constant 2 : i32
    %3 = arith.muli %arg0, %c2_i32 : i32
    %4 = arith.addi %3, %c0_i32_1 : i32
    %5 = arith.index_cast %c0_i32_1 : i32 to index
    %c0 = arith.constant 0 : index
    %c0_2 = arith.constant 0 : index
    %6 = vector.load %arg2[%5, %c0, %c0_2] : memref<2x8x32xf32, #tpu.memory_space<vmem>>, vector<1x8x32xf32>
    %7 = vector.shape_cast %6 : vector<1x8x32xf32> to vector<8x32xf32>
    %8 = arith.index_cast %c0_i32_1 : i32 to index
    %c0_3 = arith.constant 0 : index
    %c0_4 = arith.constant 0 : index
    %9 = vector.load %arg3[%8, %c0_3, %c0_4] : memref<2x32x128xbf16, #tpu.memory_space<vmem>>, vector<1x32x128xbf16>
    %10 = vector.shape_cast %9 : vector<1x32x128xbf16> to vector<32x128xbf16>
    %11 = arith.index_cast %c0_i32_1 : i32 to index
    %c0_5 = arith.constant 0 : index
    %c0_6 = arith.constant 0 : index
    %12 = vector.load %arg4[%11, %c0_5, %c0_6] : memref<2x32x128xbf16, #tpu.memory_space<vmem>>, vector<1x32x128xbf16>
    %13 = vector.shape_cast %12 : vector<1x32x128xbf16> to vector<32x128xbf16>
    %c0_7 = arith.constant 0 : index
    %c0_8 = arith.constant 0 : index
    %14 = vector.load %arg7[%c0_7, %c0_8] : memref<8x32xf32, #tpu.memory_space<vmem>>, vector<8x32xf32>
    %15 = arith.truncf %14 : vector<8x32xf32> to vector<8x32xbf16>
    %cst = arith.constant dense<0.000000e+00> : vector<8x128xf32>
    %16 = tpu.matmul %15, %10, %cst {dimension_numbers = #tpu.dot_dimension_numbers<[1], [0], [0], [1], [0, 0, 1, 1], [], []>} : vector<8x32xbf16>, vector<32x128xbf16>, vector<8x128xf32> -> vector<8x128xf32>
    %17 = arith.truncf %7 : vector<8x32xf32> to vector<8x32xbf16>
    %cst_9 = arith.constant dense<0.000000e+00> : vector<8x128xf32>
    %18 = tpu.matmul %17, %13, %cst_9 {dimension_numbers = #tpu.dot_dimension_numbers<[1], [0], [0], [1], [0, 0, 1, 1], [], []>} : vector<8x32xbf16>, vector<32x128xbf16>, vector<8x128xf32> -> vector<8x128xf32>
    %19 = arith.addf %16, %18 : vector<8x128xf32>
    %20 = arith.index_cast %4 : i32 to index
    %c0_10 = arith.constant 0 : index
    %c0_11 = arith.constant 0 : index
    %21 = vector.load %arg5[%20, %c0_10, %c0_11] : memref<2x1x128xf32, #tpu.memory_space<vmem>>, vector<1x1x128xf32>
    %22 = vector.shape_cast %21 : vector<1x1x128xf32> to vector<1x128xf32>
    %23 = vector.broadcast %22 : vector<1x128xf32> to vector<8x128xf32>
    %24 = arith.addf %19, %23 : vector<8x128xf32>
    %25 = vector.extract_strided_slice %24 {offsets = [0, 0], sizes = [8, 32], strides = [1, 1]} : vector<8x128xf32> to vector<8x32xf32>
    %26 = arith.negf %25 : vector<8x32xf32>
    %27 = math.exp %26 : vector<8x32xf32>
    %cst_12 = arith.constant 1.000000e+00 : f32
    %28 = vector.broadcast %cst_12 : f32 to vector<8x32xf32>
    %29 = arith.addf %28, %27 : vector<8x32xf32>
    %30 = arith.divf %28, %29 : vector<8x32xf32>
    %31 = vector.extract_strided_slice %24 {offsets = [0, 32], sizes = [8, 32], strides = [1, 1]} : vector<8x128xf32> to vector<8x32xf32>
    %32 = arith.negf %31 : vector<8x32xf32>
    %33 = math.exp %32 : vector<8x32xf32>
    %cst_13 = arith.constant 1.000000e+00 : f32
    %34 = vector.broadcast %cst_13 : f32 to vector<8x32xf32>
    %35 = arith.addf %34, %33 : vector<8x32xf32>
    %36 = arith.divf %34, %35 : vector<8x32xf32>
    %37 = vector.extract_strided_slice %24 {offsets = [0, 64], sizes = [8, 32], strides = [1, 1]} : vector<8x128xf32> to vector<8x32xf32>
    %38 = vector.extract_strided_slice %24 {offsets = [0, 96], sizes = [8, 32], strides = [1, 1]} : vector<8x128xf32> to vector<8x32xf32>
    %39 = arith.mulf %30, %38 : vector<8x32xf32>
    %40 = arith.addf %37, %39 : vector<8x32xf32>
    %41 = math.tanh %40 : vector<8x32xf32>
    %42 = arith.subf %7, %41 : vector<8x32xf32>
    %43 = arith.mulf %36, %42 : vector<8x32xf32>
    %44 = arith.addf %41, %43 : vector<8x32xf32>
    %45 = arith.index_cast %c0_i32_1 : i32 to index
    %c0_14 = arith.constant 0 : index
    %c0_15 = arith.constant 0 : index
    %46 = vector.load %arg6[%45, %c0_14, %c0_15] : memref<2x8x32xf32, #tpu.memory_space<vmem>>, vector<1x8x32xf32>
    %47 = vector.shape_cast %46 : vector<1x8x32xf32> to vector<8x32xf32>
    %48 = vector.shape_cast %44 : vector<8x32xf32> to vector<1x8x32xf32>
    tpu.vector_store %arg6[%45, %c0_14, %c0_15], %48 {strides = array<i32>} : memref<2x8x32xf32, #tpu.memory_space<vmem>>, vector<1x8x32xf32>,
    %c0_16 = arith.constant 0 : index
    %c0_17 = arith.constant 0 : index
    %49 = vector.load %arg7[%c0_16, %c0_17] : memref<8x32xf32, #tpu.memory_space<vmem>>, vector<8x32xf32>
    tpu.vector_store %arg7[%c0_16, %c0_17], %44 {strides = array<i32>} : memref<8x32xf32, #tpu.memory_space<vmem>>, vector<8x32xf32>,
    %c1_i32 = arith.constant 1 : i32
    %c2_i32_18 = arith.constant 2 : i32
    %50 = arith.muli %arg0, %c2_i32_18 : i32
    %51 = arith.addi %50, %c1_i32 : i32
    %52 = arith.index_cast %c1_i32 : i32 to index
    %c0_19 = arith.constant 0 : index
    %c0_20 = arith.constant 0 : index
    %53 = vector.load %arg2[%52, %c0_19, %c0_20] : memref<2x8x32xf32, #tpu.memory_space<vmem>>, vector<1x8x32xf32>
    %54 = vector.shape_cast %53 : vector<1x8x32xf32> to vector<8x32xf32>
    %55 = arith.index_cast %c1_i32 : i32 to index
    %c0_21 = arith.constant 0 : index
    %c0_22 = arith.constant 0 : index
    %56 = vector.load %arg3[%55, %c0_21, %c0_22] : memref<2x32x128xbf16, #tpu.memory_space<vmem>>, vector<1x32x128xbf16>
    %57 = vector.shape_cast %56 : vector<1x32x128xbf16> to vector<32x128xbf16>
    %58 = arith.index_cast %c1_i32 : i32 to index
    %c0_23 = arith.constant 0 : index
    %c0_24 = arith.constant 0 : index
    %59 = vector.load %arg4[%58, %c0_23, %c0_24] : memref<2x32x128xbf16, #tpu.memory_space<vmem>>, vector<1x32x128xbf16>
    %60 = vector.shape_cast %59 : vector<1x32x128xbf16> to vector<32x128xbf16>
    %c0_25 = arith.constant 0 : index
    %c0_26 = arith.constant 0 : index
    %61 = vector.load %arg7[%c0_25, %c0_26] : memref<8x32xf32, #tpu.memory_space<vmem>>, vector<8x32xf32>
    %62 = arith.truncf %61 : vector<8x32xf32> to vector<8x32xbf16>
    %cst_27 = arith.constant dense<0.000000e+00> : vector<8x128xf32>
    %63 = tpu.matmul %62, %57, %cst_27 {dimension_numbers = #tpu.dot_dimension_numbers<[1], [0], [0], [1], [0, 0, 1, 1], [], []>} : vector<8x32xbf16>, vector<32x128xbf16>, vector<8x128xf32> -> vector<8x128xf32>
    %64 = arith.truncf %54 : vector<8x32xf32> to vector<8x32xbf16>
    %cst_28 = arith.constant dense<0.000000e+00> : vector<8x128xf32>
    %65 = tpu.matmul %64, %60, %cst_28 {dimension_numbers = #tpu.dot_dimension_numbers<[1], [0], [0], [1], [0, 0, 1, 1], [], []>} : vector<8x32xbf16>, vector<32x128xbf16>, vector<8x128xf32> -> vector<8x128xf32>
    %66 = arith.addf %63, %65 : vector<8x128xf32>
    %67 = arith.index_cast %51 : i32 to index
    %c0_29 = arith.constant 0 : index
    %c0_30 = arith.constant 0 : index
    %68 = vector.load %arg5[%67, %c0_29, %c0_30] : memref<2x1x128xf32, #tpu.memory_space<vmem>>, vector<1x1x128xf32>
    %69 = vector.shape_cast %68 : vector<1x1x128xf32> to vector<1x128xf32>
    %70 = vector.broadcast %69 : vector<1x128xf32> to vector<8x128xf32>
    %71 = arith.addf %66, %70 : vector<8x128xf32>
    %72 = vector.extract_strided_slice %71 {offsets = [0, 0], sizes = [8, 32], strides = [1, 1]} : vector<8x128xf32> to vector<8x32xf32>
    %73 = arith.negf %72 : vector<8x32xf32>
    %74 = math.exp %73 : vector<8x32xf32>
    %cst_31 = arith.constant 1.000000e+00 : f32
    %75 = vector.broadcast %cst_31 : f32 to vector<8x32xf32>
    %76 = arith.addf %75, %74 : vector<8x32xf32>
    %77 = arith.divf %75, %76 : vector<8x32xf32>
    %78 = vector.extract_strided_slice %71 {offsets = [0, 32], sizes = [8, 32], strides = [1, 1]} : vector<8x128xf32> to vector<8x32xf32>
    %79 = arith.negf %78 : vector<8x32xf32>
    %80 = math.exp %79 : vector<8x32xf32>
    %cst_32 = arith.constant 1.000000e+00 : f32
    %81 = vector.broadcast %cst_32 : f32 to vector<8x32xf32>
    %82 = arith.addf %81, %80 : vector<8x32xf32>
    %83 = arith.divf %81, %82 : vector<8x32xf32>
    %84 = vector.extract_strided_slice %71 {offsets = [0, 64], sizes = [8, 32], strides = [1, 1]} : vector<8x128xf32> to vector<8x32xf32>
    %85 = vector.extract_strided_slice %71 {offsets = [0, 96], sizes = [8, 32], strides = [1, 1]} : vector<8x128xf32> to vector<8x32xf32>
    %86 = arith.mulf %77, %85 : vector<8x32xf32>
    %87 = arith.addf %84, %86 : vector<8x32xf32>
    %88 = math.tanh %87 : vector<8x32xf32>
    %89 = arith.subf %54, %88 : vector<8x32xf32>
    %90 = arith.mulf %83, %89 : vector<8x32xf32>
    %91 = arith.addf %88, %90 : vector<8x32xf32>
    %92 = arith.index_cast %c1_i32 : i32 to index
    %c0_33 = arith.constant 0 : index
    %c0_34 = arith.constant 0 : index
    %93 = vector.load %arg6[%92, %c0_33, %c0_34] : memref<2x8x32xf32, #tpu.memory_space<vmem>>, vector<1x8x32xf32>
    %94 = vector.shape_cast %93 : vector<1x8x32xf32> to vector<8x32xf32>
    %95 = vector.shape_cast %91 : vector<8x32xf32> to vector<1x8x32xf32>
    tpu.vector_store %arg6[%92, %c0_33, %c0_34], %95 {strides = array<i32>} : memref<2x8x32xf32, #tpu.memory_space<vmem>>, vector<1x8x32xf32>,
    %c0_35 = arith.constant 0 : index
    %c0_36 = arith.constant 0 : index
    %96 = vector.load %arg7[%c0_35, %c0_36] : memref<8x32xf32, #tpu.memory_space<vmem>>, vector<8x32xf32>
    tpu.vector_store %arg7[%c0_35, %c0_36], %91 {strides = array<i32>} : memref<8x32xf32, #tpu.memory_space<vmem>>, vector<8x32xf32>,
    %c2_i32_37 = arith.constant 2 : i32
    return
  }
  func.func @transform_0(%arg0: i32) -> (i32, i32) {
    %c0_i32 = arith.constant 0 : i32
    %c0_i32_0 = arith.constant 0 : i32
    %c0_i32_1 = arith.constant 0 : i32
    return %c0_i32, %c0_i32_0 : i32, i32
  }
  func.func @transform_1(%arg0: i32) -> (i32, i32, i32) {
    %c0_i32 = arith.constant 0 : i32
    %c0_i32_0 = arith.constant 0 : i32
    %c0_i32_1 = arith.constant 0 : i32
    return %arg0, %c0_i32, %c0_i32_0 : i32, i32, i32
  }
  func.func @transform_2(%arg0: i32) -> (i32, i32, i32) {
    %c0_i32 = arith.constant 0 : i32
    %c0_i32_0 = arith.constant 0 : i32
    %c0_i32_1 = arith.constant 0 : i32
    return %arg0, %c0_i32, %c0_i32_0 : i32, i32, i32
  }
  func.func @transform_3(%arg0: i32) -> (i32, i32, i32) {
    %c0_i32 = arith.constant 0 : i32
    %c0_i32_0 = arith.constant 0 : i32
    %c0_i32_1 = arith.constant 0 : i32
    return %arg0, %c0_i32, %c0_i32_0 : i32, i32, i32
  }
  func.func @transform_4(%arg0: i32) -> (i32, i32, i32) {
    %c0_i32 = arith.constant 0 : i32
    %c0_i32_0 = arith.constant 0 : i32
    %c0_i32_1 = arith.constant 0 : i32
    %c0_i32_2 = arith.constant 0 : i32
    return %c0_i32, %c0_i32_0, %c0_i32_1 : i32, i32, i32
  }
  func.func @transform_5(%arg0: i32) -> (i32, i32, i32) {
    %c0_i32 = arith.constant 0 : i32
    %c0_i32_0 = arith.constant 0 : i32
    %c0_i32_1 = arith.constant 0 : i32
    return %arg0, %c0_i32, %c0_i32_0 : i32, i32, i32
  }
}

</mosaic_0001>

<bundles_post_ra>
// kernel: tpu_custom_call.1
= control target key start
LH: loop header
LB: loop body
LE: loop exit
PB: predicated region body
PF: predicated region fallthrough
CT: control target
= control target key end

     0   :  { %10 = vsyncpa [#allocation4], 0  ;;  %s758_s0 = inlined_call_operand.hbm [shape: f32[8,32], index: 0, kind: input, shape index: {}]   ;;  %s759_s1 = inlined_call_operand.hbm [shape: f32[2,8,32], index: 1, kind: input, shape index: {}]   ;;  %s760_s2 = inlined_call_operand.hbm [shape: bf16[2,32,128], index: 2, kind: input, shape index: {}]   ;;  %s761_s3 = inlined_call_operand.hbm [shape: bf16[2,32,128], index: 3, kind: input, shape index: {}]   ;;  %s762_s4 = inlined_call_operand.vmem [shape: f32[2,1,128], index: 4, kind: input, shape index: {}]   ;;  %s763_s5 = inlined_call_operand.hbm [shape: f32[2,8,32], index: 5, kind: output, shape index: {}]  }
   0x1   :  { %11 = vsyncpa [#allocation7], 0 }
   0x2   :  { %12 = vsyncpa [#allocation10], 0 }
   0x3   :  { %13 = vsyncpa [#allocation5], 0  ;;  %s648_s18 = smov [#allocation6]  }
   0x4   :  { %s29_s19 = sshll.u32 %s648_s18, 4  ;;  %s30_s19 = int_to_ptr.vmem [resolvable:$true] %s29_s19 }
   0x5   :  { %s548_s20 = scalar_lea.vmem %s30_s19, 256  ;;  %p553_p1 = scmp.lt.s32.totalorder %s30_s19, %s30_s19 }
   0x6   :  { %p549_p0 = scmp.ne.s32.totalorder %s30_s19, %s548_s20  ;;  %p554_p2 = scmp.lt.s32.totalorder %s548_s20, %s548_s20 }
   0x8   :  { %p555_p3 = por %p554_p2, %p553_p1 }
   0xa   :  { %p556_p4 = pnand %p555_p3, %p549_p0 }
   0xc   :  { %559 = shalt.err (!%p556_p4)
}
   0xd   :  { %s649_s21 = smov 128   ;;  %s650_s22 = smov 8  }
   0xe   :  { %35 = dma.hbm_to_vmem [thread:$0]  %s759_s1, 256, %s30_s19, [#allocation7], %s649_s21, %s649_s21, %s650_s22  }
   0xf   :  { %s651_s25 = smov [#allocation3]   ;;  %s652_s27 = smov [#allocation8]  }
  0x10   :  { %s20_s26 = sshll.u32 %s651_s25, 4  ;;  %s41_s28 = sshll.u32 %s652_s27, 4  ;;  %s21_s26 = int_to_ptr.vmem [resolvable:$true] %s20_s26  ;;  %s42_s28 = int_to_ptr.vmem [resolvable:$true] %s41_s28 }
  0x11   :  { %s568_s29 = scalar_lea.vmem %s21_s26, 128  ;;  %p573_p6 = scmp.lt.s32.totalorder %s21_s26, %s21_s26 }
  0x12   :  { %p569_p5 = scmp.ne.s32.totalorder %s21_s26, %s568_s29  ;;  %p574_p7 = scmp.lt.s32.totalorder %s568_s29, %s568_s29 }
  0x14   :  { %p575_p8 = por %p574_p7, %p573_p6 }
  0x16   :  { %p576_p9 = pnand %p575_p8, %p569_p5 }
  0x18   :  { %579 = shalt.err (!%p576_p9)
}
  0x19   :  { %23 = dma.hbm_to_vmem [thread:$0]  %s758_s0, 128, %s21_s26, [#allocation4]  }
  0x1a   :  { %s588_s7 = scalar_lea.vmem %s42_s28, 512  ;;  %p593_p11 = scmp.lt.s32.totalorder %s42_s28, %s42_s28 }
  0x1b   :  { %p589_p10 = scmp.ne.s32.totalorder %s42_s28, %s588_s7  ;;  %p594_p12 = scmp.lt.s32.totalorder %s588_s7, %s588_s7 }
  0x1d   :  { %p595_p13 = por %p594_p12, %p593_p11 }
  0x1f   :  { %p596_p0 = pnand %p595_p13, %p589_p10 }
  0x21   :  { %599 = shalt.err (!%p596_p0)
}
  0x22   :  { %s653_s1 = smov 64   ;;  %s654_s8 = smov 4  }
  0x23   :  { %47 = dma.hbm_to_vmem [thread:$0]  %s760_s2, 512, %s42_s28, [#allocation7], %s653_s1, %s653_s1, %s654_s8  }
  0x24   :  { %s655_s11 = smov [#allocation9]  }
  0x25   :  { %s53_s12 = sshll.u32 %s655_s11, 4  ;;  %s54_s12 = int_to_ptr.vmem [resolvable:$true] %s53_s12 }
  0x26   :  { %s608_s0 = scalar_lea.vmem %s54_s12, 512  ;;  %p613_p2 = scmp.lt.s32.totalorder %s54_s12, %s54_s12 }
  0x27   :  { %p609_p1 = scmp.ne.s32.totalorder %s54_s12, %s608_s0  ;;  %p614_p3 = scmp.lt.s32.totalorder %s608_s0, %s608_s0 }
  0x29   :  { %p615_p4 = por %p614_p3, %p613_p2 }
  0x2b   :  { %p616_p5 = pnand %p615_p4, %p609_p1 }
  0x2d   :  { %619 = shalt.err (!%p616_p5)
}
  0x2e   :  { %59 = dma.hbm_to_vmem [thread:$0]  %s761_s3, 512, %s54_s12, [#allocation10], %s653_s1, %s653_s1, %s654_s8  }
  0x2f   :  { %640 = dma.done.wait [#allocation4], 128  }
  0x30   :  { %641 = vsyncadd [#allocation4], 4294967168 }
  0x31   :  { %642 = dma.done.wait [#allocation7], 768  }
  0x32   :  { %643 = vsyncadd [#allocation7], 4294966528 }
  0x33   :  { %644 = dma.done.wait [#allocation10], 512  }
  0x34   :  { %645 = vsyncadd [#allocation10], 4294966784  ;;  %v656_v0 = vmov 0.0   ;;  %vm657_vm0 = vmmov 0   ;;  %v520_v1 = vld [vmem:[#allocation9 + $0x8] sm:$0xff]   ;;  %v522_v3 = vld [vmem:[#allocation9] sm:$0xff]  }
  0x35   :  { %476 = vmatprep.subr.bf16.mxu0 %v656_v0  ;;  %484 = vmatprep.subr.bf16.mxu1 %v656_v0  ;;  %v521_v2 = vld [vmem:[#allocation8 + $0x8] sm:$0xff]   ;;  %vm80_vm1 = vcmask 261120   ;;  %v523_v4 = vld [vmem:[#allocation8] sm:$0xff]   ;;  %v83_v6 = vld [vmem:[#allocation6] sm:$0xff]  ;;  %s658_s15 = smov 32  }
  0x36   :  { %480 = vmatprep.mubr.msk.bf16.mxu0 %vm657_vm0, %v656_v0  ;;  %488 = vmatprep.mubr.msk.bf16.mxu1 %vm657_vm0, %v656_v0  ;;  %v79_v5 = vld [vmem:[#allocation3] sm:$0xff]  ;;  %v94_v7 = vpack.c.bf16 %v83_v6, %v83_v6  ;;  %v453_v14 = vld [vmem:[%s762_s4] ss:$0 sm:$0xff]  ;;  %v524_v32 = vld [vmem:[#allocation9 + $0x18] sm:$0xff]  }
  0x37   :  { %477 = vmatpush3.bf16.msra.mxu0 %v520_v1  ;;  %485 = vmatpush3.bf16.msra.mxu1 %v521_v2  ;;  %81 = vst.msk [vmem:[#allocation2] sm:$0xff] %vm80_vm1, %v79_v5  ;;  %v525_v35 = vld [vmem:[#allocation9 + $0x10] sm:$0xff]   ;;  %v526_v36 = vld [vmem:[#allocation8 + $0x18] sm:$0xff]   ;;  %v462_v50 = vld [vmem:[%s762_s4 + $0x1] ss:$0 sm:$0xff]  ;;  %s659_s4 = smov [#allocation11]  }
  0x38   :  { %478 = vmatprep.subr.bf16.mxu0 %v656_v0  ;;  %486 = vmatprep.subr.bf16.mxu1 %v656_v0  ;;  %v255_v37 = vld [vmem:[#allocation6 + $0x8] sm:$0xff]  ;;  %v527_v39 = vld [vmem:[#allocation8 + $0x10] sm:$0xff]   ;;  %s432_s18 = sshll.u32 %s659_s4, 4  ;;  %s433_s18 = int_to_ptr.vmem [resolvable:$true] %s432_s18 }
  0x39   :  { %v268_v38 = vpack.c.bf16 %v255_v37, %v255_v37  ;;  %s620_s19 = scalar_lea.vmem %s433_s18, 256  ;;  %p625_p7 = scmp.lt.s32.totalorder %s433_s18, %s433_s18 }
  0x3a   :  { %p621_p6 = scmp.ne.s32.totalorder %s433_s18, %s620_s19  ;;  %p626_p8 = scmp.lt.s32.totalorder %s620_s19, %s620_s19 }
  0x3b   :  { %479 = vmatpush3.bf16.msra.mxu0 %v522_v3  ;;  %487 = vmatpush3.bf16.msra.mxu1 %v523_v4 }
  0x3c   :  { %492 = vmatprep.subr.bf16.mxu0 %v656_v0  ;;  %500 = vmatprep.subr.bf16.mxu1 %v656_v0  ;;  %p627_p9 = por %p626_p8, %p625_p7 }
  0x3e   :  { %481 = vmatmul.mubr.msk.bf16.vlgmr.msra.gmra.mxu0 %vm80_vm1, %v94_v7  ;;  %v92_v8 = vld [vmem:[#allocation2] sm:$0xff]  ;;  %p628_p10 = pnand %p627_p9, %p621_p6 }
  0x3f   :  { %496 = vmatprep.mubr.msk.bf16.mxu0 %vm657_vm0, %v656_v0  ;;  %v93_v9 = vpack.c.bf16 %v92_v8, %v92_v8  ;;  %493 = vmatpush3.bf16.msra.mxu0 %v524_v32 }
  0x40   :  { %494 = vmatprep.subr.bf16.mxu0 %v656_v0 }
  0x41   :  { %489 = vmatmul.mubr.msk.bf16.vlgmr.msra.gmra.mxu1 %vm80_vm1, %v93_v9 }
  0x42   :  { %504 = vmatprep.mubr.msk.bf16.mxu1 %vm657_vm0, %v656_v0  ;;  %501 = vmatpush3.bf16.msra.mxu1 %v526_v36 }
  0x43   :  { %495 = vmatpush3.bf16.msra.mxu0 %v525_v35  ;;  %502 = vmatprep.subr.bf16.mxu1 %v656_v0 }
  0x46   :  { %497 = vmatmul.mubr.msk.bf16.vlgmr.msra.gmra.mxu0 %vm80_vm1, %v268_v38  ;;  %503 = vmatpush3.bf16.msra.mxu1 %v527_v39 }
  0xfe   :  { %v145_v10 = vpop.f32.mrf.mxu0 }
 0x100   :  { %v482_v11 = vpop.f32.mrf.mxu0 }
 0x101   :  { %v200_v13 = vpop.f32.mrf.mxu1 }
 0x102   :  { %v148_v12 = vpop.f32.mrf.mxu0  ;;  %v201_v16 = vadd.f32 %v200_v13, %v145_v10 }
 0x103   :  { %v490_v17 = vpop.f32.mrf.mxu1 }
 0x104   :  { %v483_v15 = vpop.f32.mrf.mxu0  ;;  %v214_v18 = vadd.f32 %v453_v14, %v201_v16 }
 0x105   :  { %v203_v19 = vpop.f32.mrf.mxu1 }
 0x106   :  { %222 = vrot.lane.b32.xlu0 %v214_v18, %s658_s15  ;;  %v454_v21 = vmul.f32 -1.442695, %v214_v18  ;;  %v318_v45 = vpop.f32.mrf.mxu0 }
 0x107   :  { %v491_v20 = vpop.f32.mrf.mxu1 }
 0x108   :  { %528 = vpow2.f32 %v454_v21  ;;  %v498_v46 = vpop.f32.mrf.mxu0 }
 0x10a   :  { %v321_v47 = vpop.f32.mrf.mxu0 }
 0x10c   :  { %v499_v48 = vpop.f32.mrf.mxu0 }
 0x115   :  { %v529_v22 = vpop.eup %528 }
 0x116   :  { %v218_v23 = vadd.f32 1.0, %v529_v22 }
 0x118   :  { %530 = vrcp.f32 %v218_v23 }
 0x125   :  { %v531_v24 = vpop.eup %530 }
 0x178   :  { %v223_v25 = vpop.permute.xlu0 %222 }
 0x179   :  { %v225_v26 = vmul.f32 %v531_v24, %v223_v25 }
 0x17b   :  { %227 = vrot.lane.b32.xlu0 %v225_v26, %s653_s1 }
 0x1ed   :  { %v228_v27 = vpop.permute.xlu0 %227 }
 0x1ee   :  { %v230_v28 = vadd.f32 %v228_v27, %v214_v18 }
 0x1f0   :  { %532 = vtanh.f32 %v230_v28 }
 0x1fd   :  { %v533_v29 = vpop.eup %532 }
 0x1fe   :  { %233 = vrot.lane.b32.xlu1 %v533_v29, %s653_s1 }
 0x270   :  { %v234_v30 = vpop.permute.xlu1 %233 }
 0x271   :  { %v236_v31 = vsub.f32 %v83_v6, %v234_v30 }
 0x273   :  { %238 = vrot.lane.b32.xlu1 %v236_v31, %s658_s15 }
 0x2e5   :  { %v239_v33 = vpop.permute.xlu1 %238 }
 0x2e6   :  { %v241_v34 = vmul.f32 %v531_v24, %v239_v33 }
 0x2e8   :  { %243 = vrot.lane.b32.xlu0 %v241_v34, %s658_s15 }
 0x35a   :  { %v244_v40 = vpop.permute.xlu0 %243 }
 0x35b   :  { %v246_v41 = vadd.f32 %v533_v29, %v244_v40 }
 0x35d   :  { %248 = vrot.lane.b32.xlu1 %v246_v41, %s653_s1 }
 0x3cf   :  { %v249_v42 = vpop.permute.xlu1 %248 }
 0x3d0   :  { %251 = vst.msk [vmem:[#allocation11] sm:$0xff] %vm80_vm1, %v249_v42  ;;  %252 = vst.msk [vmem:[#allocation2] sm:$0xff] %vm80_vm1, %v249_v42 }
 0x3d7   :  { %v266_v43 = vld [vmem:[#allocation2] sm:$0xff] }
 0x3d8   :  { %v267_v44 = vpack.c.bf16 %v266_v43, %v266_v43 }
 0x3da   :  { %505 = vmatmul.mubr.msk.bf16.vlgmr.msra.gmra.mxu1 %vm80_vm1, %v267_v44 }
 0x49a   :  { %v373_v49 = vpop.f32.mrf.mxu1 }
 0x49b   :  { %v374_v51 = vadd.f32 %v373_v49, %v318_v45 }
 0x49c   :  { %v506_v52 = vpop.f32.mrf.mxu1 }
 0x49d   :  { %v387_v53 = vadd.f32 %v462_v50, %v374_v51 }
 0x49e   :  { %v376_v54 = vpop.f32.mrf.mxu1 }
 0x49f   :  { %395 = vrot.lane.b32.xlu0 %v387_v53, %s658_s15  ;;  %v463_v56 = vmul.f32 -1.442695, %v387_v53 }
 0x4a0   :  { %v507_v55 = vpop.f32.mrf.mxu1 }
 0x4a1   :  { %534 = vpow2.f32 %v463_v56 }
 0x4ae   :  { %v535_v57 = vpop.eup %534 }
 0x4af   :  { %v391_v58 = vadd.f32 1.0, %v535_v57 }
 0x4b1   :  { %536 = vrcp.f32 %v391_v58 }
 0x4be   :  { %v537_v59 = vpop.eup %536 }
 0x511   :  { %v396_v60 = vpop.permute.xlu0 %395 }
 0x512   :  { %v398_v61 = vmul.f32 %v537_v59, %v396_v60 }
 0x514   :  { %400 = vrot.lane.b32.xlu1 %v398_v61, %s653_s1 }
 0x586   :  { %v401_v62 = vpop.permute.xlu1 %400 }
 0x587   :  { %v403_v63 = vadd.f32 %v401_v62, %v387_v53 }
 0x589   :  { %538 = vtanh.f32 %v403_v63 }
 0x596   :  { %v539_v0 = vpop.eup %538 }
 0x597   :  { %406 = vrot.lane.b32.xlu0 %v539_v0, %s653_s1 }
 0x609   :  { %v407_v1 = vpop.permute.xlu0 %406 }
 0x60a   :  { %v409_v2 = vsub.f32 %v255_v37, %v407_v1 }
 0x60c   :  { %411 = vrot.lane.b32.xlu1 %v409_v2, %s658_s15 }
 0x67e   :  { %v412_v3 = vpop.permute.xlu1 %411 }
 0x67f   :  { %v414_v4 = vmul.f32 %v537_v59, %v412_v3 }
 0x681   :  { %416 = vrot.lane.b32.xlu0 %v414_v4, %s658_s15 }
 0x6f3   :  { %v417_v5 = vpop.permute.xlu0 %416 }
 0x6f4   :  { %v419_v6 = vadd.f32 %v539_v0, %v417_v5 }
 0x6f6   :  { %421 = vrot.lane.b32.xlu1 %v419_v6, %s653_s1 }
 0x768   :  { %v422_v7 = vpop.permute.xlu1 %421 }
 0x769   :  { %425 = vst.msk [vmem:[#allocation11 + $0x8] sm:$0xff] %vm80_vm1, %v422_v7  ;;  %426 = vst.msk [vmem:[#allocation2] sm:$0xff] %vm80_vm1, %v422_v7 }
 0x76a   :  { %631 = shalt.err (!%p628_p10)
}
 0x76b   :  { %438 = dma.vmem_to_hbm [thread:$0]  %s433_s18, 256, %s763_s5, [#allocation5], %s649_s21, %s649_s21, %s650_s22  }
 0x76c   :  { %646 = dma.done.wait [#allocation5], 256  }
 0x76d   :  { %647 = vsyncadd [#allocation5], 4294967040 }
 0x76e   :  { %442 = vsyncpa [#allocation4], 1 }
 0x76f   :  { %443 = vsyncpa [#allocation7], 1 }
 0x770   :  { %444 = vsyncpa [#allocation10], 1 }
 0x771   :  { %445 = vsyncpa [#allocation5], 1 }

</bundles_post_ra>
